<compile_context>
chip_gen: v6e
topology: v6e:2x2x1
jax: 0.10.0
libtpu: 0.0.40
codegen_flags: <defaults>
</compile_context>

<pallas_src>
import jax
import jax.numpy as jnp
from jax.experimental import pallas as pl
from jax.experimental.pallas import tpu as pltpu


# ----------------------------------------------------------------------------
# Pallas kernel: full encoder stack for one (Bt, L, C) batch tile.
# Grid = (batch_tiles, layers); activations live in the xact VMEM scratch.
# ----------------------------------------------------------------------------
def encoder_stack_kernel(x_ref,
                         wqkv_ref, bqkv_ref,
                         wo_ref, bo_ref,
                         w1_ref, b1_ref, w2_ref, b2_ref,
                         g1_ref, be1_ref, g2_ref, be2_ref,
                         out_ref, xact_ref):
    f32 = jnp.float32
    bf16 = jnp.bfloat16
    Bt, L, C = xact_ref.shape
    layer = pl.program_id(1)

    # Load the input tile into the resident activation scratch at layer 0.
    @pl.when(layer == 0)
    def _():
        xact_ref[...] = x_ref[...].astype(f32)

    x3 = xact_ref[...]                          # (Bt, L, C) f32
    xf = x3.reshape(Bt * L, C)                  # flattened rows for the MXU

    def layer_norm(y, g, b, eps=1e-5):
        # two-pass variance (avoids catastrophic cancellation of E[y^2]-mu^2)
        mu = jnp.mean(y, axis=-1, keepdims=True)
        cen = y - mu
        var = jnp.mean(cen * cen, axis=-1, keepdims=True)
        return cen * jax.lax.rsqrt(var + eps) * g + b

    # --- fused Q/K/V projection (bf16 operands, f32 accumulation) -----------
    # 1/sqrt(C) is already folded into the Q columns of wqkv / bqkv.
    qkv = jnp.dot(xf.astype(bf16), wqkv_ref[...],
                  preferred_element_type=f32) + bqkv_ref[...]     # (Bt*L, 3C)
    q = qkv[:, :C].reshape(Bt, L, C)
    k = qkv[:, C:2 * C].reshape(Bt, L, C)
    v = qkv[:, 2 * C:].reshape(Bt, L, C)

    # --- attention: contract C axes directly, batched over Bt ---------------
    s = jnp.einsum("bld,bmd->blm", q.astype(bf16), k.astype(bf16),
                   preferred_element_type=f32)                    # (Bt, L, L)
    s = s - jnp.max(s, axis=-1, keepdims=True)
    p = jnp.exp(s)
    p = p * pl.reciprocal(jnp.sum(p, axis=-1, keepdims=True), approx=True)

    ctx = jnp.einsum("blm,bmd->bld", p.astype(bf16), v.astype(bf16),
                     preferred_element_type=f32)                  # (Bt, L, C)
    ctxf = ctx.reshape(Bt * L, C)

    attn_out = jnp.dot(ctxf.astype(bf16), wo_ref[...],
                       preferred_element_type=f32) + bo_ref[...]

    x1 = layer_norm(xf + attn_out, g1_ref[...], be1_ref[...])

    # --- feed-forward --------------------------------------------------------
    h = jnp.dot(x1.astype(bf16), w1_ref[...],
                preferred_element_type=f32) + b1_ref[...]
    h = jnp.maximum(h, 0.0)
    ff = jnp.dot(h.astype(bf16), w2_ref[...],
                 preferred_element_type=f32) + b2_ref[...]

    x2 = layer_norm(x1 + ff, g2_ref[...], be2_ref[...])

    # Keep activations resident; emit to HBM only after the last layer.
    xact_ref[...] = x2.reshape(Bt, L, C)

    @pl.when(layer == pl.num_programs(1) - 1)
    def _():
        out_ref[...] = xact_ref[...].astype(out_ref.dtype)


# ----------------------------------------------------------------------------
# Generation-aware knobs.
# ----------------------------------------------------------------------------
def _device_kind():
    try:
        return jax.devices()[0].device_kind.lower()
    except Exception:
        return ""


def _num_tensorcores_per_chip():
    # 2 TensorCores per chip only on v7x; v5e/v6e (and older) are 1 TC.
    return 2 if "v7" in _device_kind() else 1


def _vmem_limit_bytes():
    kind = _device_kind()
    if "v7" in kind:
        return 48 * 1024 * 1024      # 64 MiB physical -> leave headroom
    if "v5" in kind or "v6" in kind:
        return 96 * 1024 * 1024      # 128 MiB physical
    return 32 * 1024 * 1024          # conservative default elsewhere


def _choose_block_batch(B, L, C, F, vmem_limit, num_tc, target_rows=256):
    divisors = [d for d in range(1, B + 1) if B % d == 0]

    def vmem_bytes(bt):
        rows = bt * L
        io_blocks = 2 * 2 * rows * C * 4                      # x + out, 2-buffered f32
        weights = 2 * 2 * (3 * C * C + C * C + 2 * C * F)     # bf16, 2-buffered
        live = (8 * rows * C + bt * L * L + 2 * rows * F) * 4  # f32 intermediates
        return io_blocks + weights + live

    budget = int(vmem_limit * 0.7)
    feasible = [d for d in divisors if vmem_bytes(d) <= budget] or [1]

    bt = feasible[-1]
    for d in feasible:                      # smallest tile that fills the MXU rows
        if d * L >= target_rows:
            bt = d
            break

    # Only pay the extra grid steps where a second TensorCore exists (v7x).
    if num_tc >= 2:
        while bt > 1 and B // bt < num_tc:
            smaller = [d for d in feasible if d < bt]
            if not smaller:
                break
            bt = smaller[-1]
    return bt


# ----------------------------------------------------------------------------
# Wrapper: ONE pallas_call for the whole encoder stack.
# ----------------------------------------------------------------------------
def encoder_forward(x, stacked_params, block_batch=None):
    B, L, C = x.shape
    NL = stacked_params["wqkv"].shape[0]
    F = stacked_params["w1"].shape[-1]

    num_tc = _num_tensorcores_per_chip()
    vmem_limit = _vmem_limit_bytes()
    Bt = block_batch if block_batch is not None else _choose_block_batch(
        B, L, C, F, vmem_limit, num_tc)
    assert B % Bt == 0

    order = ("wqkv", "bqkv", "wo", "bo", "w1", "b1", "w2", "b2",
             "g1", "be1", "g2", "be2")
    plist = [stacked_params[name] for name in order]

    in_specs = [pl.BlockSpec((Bt, L, C), lambda b, l: (b, 0, 0))]
    for p in plist:
        r, c = p.shape[1], p.shape[2]
        # layer-indexed weight/bias blocks (layer dim squeezed in the kernel)
        in_specs.append(pl.BlockSpec((None, r, c), lambda b, l: (l, 0, 0)))
    out_specs = pl.BlockSpec((Bt, L, C), lambda b, l: (b, 0, 0))

    return pl.pallas_call(
        encoder_stack_kernel,
        out_shape=jax.ShapeDtypeStruct((B, L, C), x.dtype),
        grid_spec=pltpu.PrefetchScalarGridSpec(
            num_scalar_prefetch=0,
            grid=(B // Bt, NL),
            in_specs=in_specs,
            out_specs=out_specs,
            scratch_shapes=[pltpu.VMEM((Bt, L, C), jnp.float32)],
        ),
        compiler_params=pltpu.CompilerParams(
            dimension_semantics=("parallel", "arbitrary"),
            vmem_limit_bytes=vmem_limit,
        ),
    )(x, *plist)


# ----------------------------------------------------------------------------
# Parameter init (synthetic, deterministic) + one-time preparation.
# ----------------------------------------------------------------------------
def init_layer_params(key, C, F):
    ks = jax.random.split(key, 4)
    s_c = C ** -0.5
    s_f = F ** -0.5
    return {
        "wqkv": jax.random.normal(ks[0], (C, 3 * C), jnp.float32) * s_c,
        "bqkv": jnp.zeros((1, 3 * C), jnp.float32),
        "wo": jax.random.normal(ks[1], (C, C), jnp.float32) * s_c,
        "bo": jnp.zeros((1, C), jnp.float32),
        "w1": jax.random.normal(ks[2], (C, F), jnp.float32) * s_c,
        "b1": jnp.zeros((1, F), jnp.float32),
        "w2": jax.random.normal(ks[3], (F, C), jnp.float32) * s_f,
        "b2": jnp.zeros((1, C), jnp.float32),
        "g1": jnp.ones((1, C), jnp.float32),
        "be1": jnp.zeros((1, C), jnp.float32),
        "g2": jnp.ones((1, C), jnp.float32),
        "be2": jnp.zeros((1, C), jnp.float32),
    }


def prepare_encoder_params(layer_params_list):
    """Done ONCE: fold 1/sqrt(C) into the Q columns, cast matmul weights to
    bf16, and stack every parameter along a leading layer axis."""
    C = layer_params_list[0]["wqkv"].shape[0]
    scale = C ** -0.5
    mm_names = ("wqkv", "wo", "w1", "w2")
    names = ("wqkv", "bqkv", "wo", "bo", "w1", "b1", "w2", "b2",
             "g1", "be1", "g2", "be2")

    folded = []
    for p in layer_params_list:
        q = dict(p)
        q["wqkv"] = p["wqkv"].at[:, :C].multiply(scale)
        q["bqkv"] = p["bqkv"].at[:, :C].multiply(scale)
        folded.append(q)

    stacked = {}
    for name in names:
        arr = jnp.stack([q[name] for q in folded], axis=0)
        if name in mm_names:
            arr = arr.astype(jnp.bfloat16)   # cast once, not per forward call
        stacked[name] = arr
    return stacked


# ----------------------------------------------------------------------------
# Pure-JAX references (f32 and bf16-matmul mirror) for correctness checking.
# ----------------------------------------------------------------------------
def ref_layer(x, p, mm_dtype=jnp.float32):
    B, L, C = x.shape
    scale = C ** -0.5

    def mm(a, w):
        return jnp.dot(a.astype(mm_dtype), w.astype(mm_dtype),
                       preferred_element_type=jnp.float32)

    def ln(y, g, b, eps=1e-5):
        mu = jnp.mean(y, axis=-1, keepdims=True)
        cen = y - mu
        var = jnp.mean(cen * cen, axis=-1, keepdims=True)
        return cen * jax.lax.rsqrt(var + eps) * g + b

    wqkv = p["wqkv"].at[:, :C].multiply(scale)
    bqkv = p["bqkv"].at[:, :C].multiply(scale)

    xf = x.reshape(B * L, C)
    qkv = mm(xf, wqkv) + bqkv
    q = qkv[:, :C].reshape(B, L, C)
    k = qkv[:, C:2 * C].reshape(B, L, C)
    v = qkv[:, 2 * C:].reshape(B, L, C)

    s = jnp.einsum("blc,bmc->blm", q.astype(mm_dtype), k.astype(mm_dtype),
                   preferred_element_type=jnp.float32)
    a = jax.nn.softmax(s, axis=-1)
    ctx = jnp.einsum("blm,bmc->blc", a.astype(mm_dtype), v.astype(mm_dtype),
                     preferred_element_type=jnp.float32)

    x1 = ln(xf + mm(ctx.reshape(B * L, C), p["wo"]) + p["bo"],
            p["g1"], p["be1"])
    h = jnp.maximum(mm(x1, p["w1"]) + p["b1"], 0.0)
    x2 = ln(x1 + mm(h, p["w2"]) + p["b2"], p["g2"], p["be2"])
    return x2.reshape(B, L, C)


def ref_encoder(x, layer_params_list, mm_dtype=jnp.float32):
    for p in layer_params_list:
        x = ref_layer(x, p, mm_dtype=mm_dtype)
    return x


if __name__ == "__main__":
    B, L, C, F = 2, 8, 32, 64
    num_layers = 2

    root = jax.random.PRNGKey(0)
    kx, *kls = jax.random.split(root, 1 + num_layers)
    x = jax.random.normal(kx, (B, L, C), jnp.float32)
    layer_params = [init_layer_params(k, C, F) for k in kls]
    stacked = prepare_encoder_params(layer_params)

    out = encoder_forward(x, stacked)
    out = jax.block_until_ready(out)
    assert out.shape == (B, L, C)

    # Loose check vs pure f32 math (module semantics) and a tight check vs a
    # mixed-precision reference that mirrors the kernel's bf16 matmul casts
    # (only remaining delta is the EUP approximate reciprocal in softmax).
    ref32 = ref_encoder(x, layer_params, mm_dtype=jnp.float32)
    refmx = ref_encoder(x, layer_params, mm_dtype=jnp.bfloat16)
    err32 = float(jnp.max(jnp.abs(out - ref32)))
    errmx = float(jnp.max(jnp.abs(out - refmx)))
    assert err32 < 1e-1, ("f32 reference mismatch", err32)
    assert errmx < 2e-2, ("mixed-precision reference mismatch", errmx)

    print("KERNEL_OK")
</pallas_src>

<mosaic_0001>
module attributes {stable_mosaic.version = 11 : i64} {
  func.func @encoder_stack_kernel(%arg0: i32, %arg1: i32, %arg2: memref<2x8x32xf32, #tpu.memory_space<vmem>>, %arg3: memref<1x32x96xbf16, #tpu.memory_space<vmem>>, %arg4: memref<1x1x96xf32, #tpu.memory_space<vmem>>, %arg5: memref<1x32x32xbf16, #tpu.memory_space<vmem>>, %arg6: memref<1x1x32xf32, #tpu.memory_space<vmem>>, %arg7: memref<1x32x64xbf16, #tpu.memory_space<vmem>>, %arg8: memref<1x1x64xf32, #tpu.memory_space<vmem>>, %arg9: memref<1x64x32xbf16, #tpu.memory_space<vmem>>, %arg10: memref<1x1x32xf32, #tpu.memory_space<vmem>>, %arg11: memref<1x1x32xf32, #tpu.memory_space<vmem>>, %arg12: memref<1x1x32xf32, #tpu.memory_space<vmem>>, %arg13: memref<1x1x32xf32, #tpu.memory_space<vmem>>, %arg14: memref<1x1x32xf32, #tpu.memory_space<vmem>>, %arg15: memref<2x8x32xf32, #tpu.memory_space<vmem>>, %arg16: memref<2x8x32xf32, #tpu.memory_space<vmem>>) attributes {dimension_semantics = [#tpu.dimension_semantics<parallel>, #tpu.dimension_semantics<arbitrary>], iteration_bounds = array<i64: 1, 2>, scalar_prefetch = 0 : i64, scratch_operands = 1 : i64, tpu.core_type = #tpu.core_type<tc>, window_params = [{transform_indices = @transform_0, window_bounds = array<i64: 2, 8, 32>}, {transform_indices = @transform_1, window_bounds = array<i64: 1, 32, 96>}, {transform_indices = @transform_2, window_bounds = array<i64: 1, 1, 96>}, {transform_indices = @transform_3, window_bounds = array<i64: 1, 32, 32>}, {transform_indices = @transform_4, window_bounds = array<i64: 1, 1, 32>}, {transform_indices = @transform_5, window_bounds = array<i64: 1, 32, 64>}, {transform_indices = @transform_6, window_bounds = array<i64: 1, 1, 64>}, {transform_indices = @transform_7, window_bounds = array<i64: 1, 64, 32>}, {transform_indices = @transform_8, window_bounds = array<i64: 1, 1, 32>}, {transform_indices = @transform_9, window_bounds = array<i64: 1, 1, 32>}, {transform_indices = @transform_10, window_bounds = array<i64: 1, 1, 32>}, {transform_indices = @transform_11, window_bounds = array<i64: 1, 1, 32>}, {transform_indices = @transform_12, window_bounds = array<i64: 1, 1, 32>}, {transform_indices = @transform_13, window_bounds = array<i64: 2, 8, 32>}]} {
    %c0_i32 = arith.constant 0 : i32
    %0 = arith.cmpi eq, %arg1, %c0_i32 : i32
    %1 = arith.extui %0 : i1 to i32
    %c0_i32_0 = arith.constant 0 : i32
    %2 = arith.cmpi ne, %1, %c0_i32_0 : i32
    scf.if %2 {
      %c0_61 = arith.constant 0 : index
      %c0_62 = arith.constant 0 : index
      %c0_63 = arith.constant 0 : index
      %117 = vector.load %arg2[%c0_61, %c0_62, %c0_63] : memref<2x8x32xf32, #tpu.memory_space<vmem>>, vector<2x8x32xf32>
      %c0_64 = arith.constant 0 : index
      %c0_65 = arith.constant 0 : index
      %c0_66 = arith.constant 0 : index
      %118 = vector.load %arg16[%c0_64, %c0_65, %c0_66] : memref<2x8x32xf32, #tpu.memory_space<vmem>>, vector<2x8x32xf32>
      tpu.vector_store %arg16[%c0_64, %c0_65, %c0_66], %117 {strides = array<i32>} : memref<2x8x32xf32, #tpu.memory_space<vmem>>, vector<2x8x32xf32>,
    } else {
    }
    %c0 = arith.constant 0 : index
    %c0_1 = arith.constant 0 : index
    %c0_2 = arith.constant 0 : index
    %3 = vector.load %arg16[%c0, %c0_1, %c0_2] : memref<2x8x32xf32, #tpu.memory_space<vmem>>, vector<2x8x32xf32>
    %4 = vector.shape_cast %3 : vector<2x8x32xf32> to vector<16x32xf32>
    %5 = arith.truncf %4 : vector<16x32xf32> to vector<16x32xbf16>
    %c0_3 = arith.constant 0 : index
    %c0_4 = arith.constant 0 : index
    %c0_5 = arith.constant 0 : index
    %6 = vector.load %arg3[%c0_3, %c0_4, %c0_5] : memref<1x32x96xbf16, #tpu.memory_space<vmem>>, vector<1x32x96xbf16>
    %7 = vector.shape_cast %6 : vector<1x32x96xbf16> to vector<32x96xbf16>
    %cst = arith.constant dense<0.000000e+00> : vector<16x96xf32>
    %8 = tpu.matmul %5, %7, %cst {dimension_numbers = #tpu.dot_dimension_numbers<[1], [0], [0], [1], [0, 0, 1, 1], [], []>} : vector<16x32xbf16>, vector<32x96xbf16>, vector<16x96xf32> -> vector<16x96xf32>
    %c0_6 = arith.constant 0 : index
    %c0_7 = arith.constant 0 : index
    %c0_8 = arith.constant 0 : index
    %9 = vector.load %arg4[%c0_6, %c0_7, %c0_8] : memref<1x1x96xf32, #tpu.memory_space<vmem>>, vector<1x1x96xf32>
    %10 = vector.shape_cast %9 : vector<1x1x96xf32> to vector<1x96xf32>
    %11 = vector.broadcast %10 : vector<1x96xf32> to vector<16x96xf32>
    %12 = arith.addf %8, %11 : vector<16x96xf32>
    %13 = vector.extract_strided_slice %12 {offsets = [0, 0], sizes = [16, 32], strides = [1, 1]} : vector<16x96xf32> to vector<16x32xf32>
    %14 = vector.shape_cast %13 : vector<16x32xf32> to vector<2x8x32xf32>
    %15 = vector.extract_strided_slice %12 {offsets = [0, 32], sizes = [16, 32], strides = [1, 1]} : vector<16x96xf32> to vector<16x32xf32>
    %16 = vector.shape_cast %15 : vector<16x32xf32> to vector<2x8x32xf32>
    %17 = vector.extract_strided_slice %12 {offsets = [0, 64], sizes = [16, 32], strides = [1, 1]} : vector<16x96xf32> to vector<16x32xf32>
    %18 = vector.shape_cast %17 : vector<16x32xf32> to vector<2x8x32xf32>
    %19 = arith.truncf %14 : vector<2x8x32xf32> to vector<2x8x32xbf16>
    %20 = arith.truncf %16 : vector<2x8x32xf32> to vector<2x8x32xbf16>
    "tpu.trace_start"() <{level = 10 : i32, message = "bld,bmd->blm"}> : () -> ()
    %cst_9 = arith.constant dense<0.000000e+00> : vector<2x8x8xf32>
    %21 = tpu.matmul %19, %20, %cst_9 {dimension_numbers = #tpu.dot_dimension_numbers<[2], [2], [1], [1], [0, 0, 0, 1, 1, 1], [0], [0]>} : vector<2x8x32xbf16>, vector<2x8x32xbf16>, vector<2x8x8xf32> -> vector<2x8x8xf32>
    "tpu.trace_stop"() : () -> ()
    %cst_10 = arith.constant dense<0xFF800000> : vector<2x8xf32>
    %22 = vector.multi_reduction <maximumf>, %21, %cst_10 [2] : vector<2x8x8xf32> to vector<2x8xf32>
    %23 = vector.shape_cast %22 : vector<2x8xf32> to vector<2x8x1xf32>
    %24 = vector.broadcast %23 : vector<2x8x1xf32> to vector<2x8x8xf32>
    %25 = arith.subf %21, %24 : vector<2x8x8xf32>
    %26 = math.exp %25 : vector<2x8x8xf32>
    %cst_11 = arith.constant dense<0.000000e+00> : vector<2x8xf32>
    %27 = vector.multi_reduction <add>, %26, %cst_11 [2] : vector<2x8x8xf32> to vector<2x8xf32>
    %28 = vector.shape_cast %27 : vector<2x8xf32> to vector<2x8x1xf32>
    %29 = tpu.reciprocal %28 {approx = true} : vector<2x8x1xf32> -> vector<2x8x1xf32>
    %30 = vector.broadcast %29 : vector<2x8x1xf32> to vector<2x8x8xf32>
    %31 = arith.mulf %26, %30 : vector<2x8x8xf32>
    %32 = arith.truncf %31 : vector<2x8x8xf32> to vector<2x8x8xbf16>
    %33 = arith.truncf %18 : vector<2x8x32xf32> to vector<2x8x32xbf16>
    "tpu.trace_start"() <{level = 10 : i32, message = "blm,bmd->bld"}> : () -> ()
    %cst_12 = arith.constant dense<0.000000e+00> : vector<2x8x32xf32>
    %34 = tpu.matmul %32, %33, %cst_12 {dimension_numbers = #tpu.dot_dimension_numbers<[2], [1], [1], [2], [0, 0, 0, 1, 1, 2], [0], [0]>} : vector<2x8x8xbf16>, vector<2x8x32xbf16>, vector<2x8x32xf32> -> vector<2x8x32xf32>
    "tpu.trace_stop"() : () -> ()
    %35 = vector.shape_cast %34 : vector<2x8x32xf32> to vector<16x32xf32>
    %36 = arith.truncf %35 : vector<16x32xf32> to vector<16x32xbf16>
    %c0_13 = arith.constant 0 : index
    %c0_14 = arith.constant 0 : index
    %c0_15 = arith.constant 0 : index
    %37 = vector.load %arg5[%c0_13, %c0_14, %c0_15] : memref<1x32x32xbf16, #tpu.memory_space<vmem>>, vector<1x32x32xbf16>
    %38 = vector.shape_cast %37 : vector<1x32x32xbf16> to vector<32x32xbf16>
    %cst_16 = arith.constant dense<0.000000e+00> : vector<16x32xf32>
    %39 = tpu.matmul %36, %38, %cst_16 {dimension_numbers = #tpu.dot_dimension_numbers<[1], [0], [0], [1], [0, 0, 1, 1], [], []>} : vector<16x32xbf16>, vector<32x32xbf16>, vector<16x32xf32> -> vector<16x32xf32>
    %c0_17 = arith.constant 0 : index
    %c0_18 = arith.constant 0 : index
    %c0_19 = arith.constant 0 : index
    %40 = vector.load %arg6[%c0_17, %c0_18, %c0_19] : memref<1x1x32xf32, #tpu.memory_space<vmem>>, vector<1x1x32xf32>
    %41 = vector.shape_cast %40 : vector<1x1x32xf32> to vector<1x32xf32>
    %42 = vector.broadcast %41 : vector<1x32xf32> to vector<16x32xf32>
    %43 = arith.addf %39, %42 : vector<16x32xf32>
    %44 = arith.addf %4, %43 : vector<16x32xf32>
    %c0_20 = arith.constant 0 : index
    %c0_21 = arith.constant 0 : index
    %c0_22 = arith.constant 0 : index
    %45 = vector.load %arg11[%c0_20, %c0_21, %c0_22] : memref<1x1x32xf32, #tpu.memory_space<vmem>>, vector<1x1x32xf32>
    %46 = vector.shape_cast %45 : vector<1x1x32xf32> to vector<1x32xf32>
    %c0_23 = arith.constant 0 : index
    %c0_24 = arith.constant 0 : index
    %c0_25 = arith.constant 0 : index
    %47 = vector.load %arg12[%c0_23, %c0_24, %c0_25] : memref<1x1x32xf32, #tpu.memory_space<vmem>>, vector<1x1x32xf32>
    %48 = vector.shape_cast %47 : vector<1x1x32xf32> to vector<1x32xf32>
    %cst_26 = arith.constant dense<0.000000e+00> : vector<16xf32>
    %49 = vector.multi_reduction <add>, %44, %cst_26 [1] : vector<16x32xf32> to vector<16xf32>
    %50 = vector.shape_cast %49 : vector<16xf32> to vector<16x1xf32>
    %cst_27 = arith.constant 3.200000e+01 : f32
    %51 = vector.broadcast %cst_27 : f32 to vector<16x1xf32>
    %52 = arith.divf %50, %51 : vector<16x1xf32>
    %53 = vector.broadcast %52 : vector<16x1xf32> to vector<16x32xf32>
    %54 = arith.subf %44, %53 : vector<16x32xf32>
    %55 = arith.mulf %54, %54 : vector<16x32xf32>
    %cst_28 = arith.constant dense<0.000000e+00> : vector<16xf32>
    %56 = vector.multi_reduction <add>, %55, %cst_28 [1] : vector<16x32xf32> to vector<16xf32>
    %57 = vector.shape_cast %56 : vector<16xf32> to vector<16x1xf32>
    %cst_29 = arith.constant 3.200000e+01 : f32
    %58 = vector.broadcast %cst_29 : f32 to vector<16x1xf32>
    %59 = arith.divf %57, %58 : vector<16x1xf32>
    %cst_30 = arith.constant 9.99999974E-6 : f32
    %60 = vector.broadcast %cst_30 : f32 to vector<16x1xf32>
    %61 = arith.addf %59, %60 : vector<16x1xf32>
    %62 = math.rsqrt %61 : vector<16x1xf32>
    %63 = vector.broadcast %62 : vector<16x1xf32> to vector<16x32xf32>
    %64 = arith.mulf %54, %63 : vector<16x32xf32>
    %65 = vector.broadcast %46 : vector<1x32xf32> to vector<16x32xf32>
    %66 = arith.mulf %64, %65 : vector<16x32xf32>
    %67 = vector.broadcast %48 : vector<1x32xf32> to vector<16x32xf32>
    %68 = arith.addf %66, %67 : vector<16x32xf32>
    %69 = arith.truncf %68 : vector<16x32xf32> to vector<16x32xbf16>
    %c0_31 = arith.constant 0 : index
    %c0_32 = arith.constant 0 : index
    %c0_33 = arith.constant 0 : index
    %70 = vector.load %arg7[%c0_31, %c0_32, %c0_33] : memref<1x32x64xbf16, #tpu.memory_space<vmem>>, vector<1x32x64xbf16>
    %71 = vector.shape_cast %70 : vector<1x32x64xbf16> to vector<32x64xbf16>
    %cst_34 = arith.constant dense<0.000000e+00> : vector<16x64xf32>
    %72 = tpu.matmul %69, %71, %cst_34 {dimension_numbers = #tpu.dot_dimension_numbers<[1], [0], [0], [1], [0, 0, 1, 1], [], []>} : vector<16x32xbf16>, vector<32x64xbf16>, vector<16x64xf32> -> vector<16x64xf32>
    %c0_35 = arith.constant 0 : index
    %c0_36 = arith.constant 0 : index
    %c0_37 = arith.constant 0 : index
    %73 = vector.load %arg8[%c0_35, %c0_36, %c0_37] : memref<1x1x64xf32, #tpu.memory_space<vmem>>, vector<1x1x64xf32>
    %74 = vector.shape_cast %73 : vector<1x1x64xf32> to vector<1x64xf32>
    %75 = vector.broadcast %74 : vector<1x64xf32> to vector<16x64xf32>
    %76 = arith.addf %72, %75 : vector<16x64xf32>
    %cst_38 = arith.constant 0.000000e+00 : f32
    %77 = vector.broadcast %cst_38 : f32 to vector<16x64xf32>
    %78 = arith.maximumf %76, %77 : vector<16x64xf32>
    %79 = arith.truncf %78 : vector<16x64xf32> to vector<16x64xbf16>
    %c0_39 = arith.constant 0 : index
    %c0_40 = arith.constant 0 : index
    %c0_41 = arith.constant 0 : index
    %80 = vector.load %arg9[%c0_39, %c0_40, %c0_41] : memref<1x64x32xbf16, #tpu.memory_space<vmem>>, vector<1x64x32xbf16>
    %81 = vector.shape_cast %80 : vector<1x64x32xbf16> to vector<64x32xbf16>
    %cst_42 = arith.constant dense<0.000000e+00> : vector<16x32xf32>
    %82 = tpu.matmul %79, %81, %cst_42 {dimension_numbers = #tpu.dot_dimension_numbers<[1], [0], [0], [1], [0, 0, 1, 1], [], []>} : vector<16x64xbf16>, vector<64x32xbf16>, vector<16x32xf32> -> vector<16x32xf32>
    %c0_43 = arith.constant 0 : index
    %c0_44 = arith.constant 0 : index
    %c0_45 = arith.constant 0 : index
    %83 = vector.load %arg10[%c0_43, %c0_44, %c0_45] : memref<1x1x32xf32, #tpu.memory_space<vmem>>, vector<1x1x32xf32>
    %84 = vector.shape_cast %83 : vector<1x1x32xf32> to vector<1x32xf32>
    %85 = vector.broadcast %84 : vector<1x32xf32> to vector<16x32xf32>
    %86 = arith.addf %82, %85 : vector<16x32xf32>
    %87 = arith.addf %68, %86 : vector<16x32xf32>
    %c0_46 = arith.constant 0 : index
    %c0_47 = arith.constant 0 : index
    %c0_48 = arith.constant 0 : index
    %88 = vector.load %arg13[%c0_46, %c0_47, %c0_48] : memref<1x1x32xf32, #tpu.memory_space<vmem>>, vector<1x1x32xf32>
    %89 = vector.shape_cast %88 : vector<1x1x32xf32> to vector<1x32xf32>
    %c0_49 = arith.constant 0 : index
    %c0_50 = arith.constant 0 : index
    %c0_51 = arith.constant 0 : index
    %90 = vector.load %arg14[%c0_49, %c0_50, %c0_51] : memref<1x1x32xf32, #tpu.memory_space<vmem>>, vector<1x1x32xf32>
    %91 = vector.shape_cast %90 : vector<1x1x32xf32> to vector<1x32xf32>
    %cst_52 = arith.constant dense<0.000000e+00> : vector<16xf32>
    %92 = vector.multi_reduction <add>, %87, %cst_52 [1] : vector<16x32xf32> to vector<16xf32>
    %93 = vector.shape_cast %92 : vector<16xf32> to vector<16x1xf32>
    %cst_53 = arith.constant 3.200000e+01 : f32
    %94 = vector.broadcast %cst_53 : f32 to vector<16x1xf32>
    %95 = arith.divf %93, %94 : vector<16x1xf32>
    %96 = vector.broadcast %95 : vector<16x1xf32> to vector<16x32xf32>
    %97 = arith.subf %87, %96 : vector<16x32xf32>
    %98 = arith.mulf %97, %97 : vector<16x32xf32>
    %cst_54 = arith.constant dense<0.000000e+00> : vector<16xf32>
    %99 = vector.multi_reduction <add>, %98, %cst_54 [1] : vector<16x32xf32> to vector<16xf32>
    %100 = vector.shape_cast %99 : vector<16xf32> to vector<16x1xf32>
    %cst_55 = arith.constant 3.200000e+01 : f32
    %101 = vector.broadcast %cst_55 : f32 to vector<16x1xf32>
    %102 = arith.divf %100, %101 : vector<16x1xf32>
    %cst_56 = arith.constant 9.99999974E-6 : f32
    %103 = vector.broadcast %cst_56 : f32 to vector<16x1xf32>
    %104 = arith.addf %102, %103 : vector<16x1xf32>
    %105 = math.rsqrt %104 : vector<16x1xf32>
    %106 = vector.broadcast %105 : vector<16x1xf32> to vector<16x32xf32>
    %107 = arith.mulf %97, %106 : vector<16x32xf32>
    %108 = vector.broadcast %89 : vector<1x32xf32> to vector<16x32xf32>
    %109 = arith.mulf %107, %108 : vector<16x32xf32>
    %110 = vector.broadcast %91 : vector<1x32xf32> to vector<16x32xf32>
    %111 = arith.addf %109, %110 : vector<16x32xf32>
    %112 = vector.shape_cast %111 : vector<16x32xf32> to vector<2x8x32xf32>
    %c0_57 = arith.constant 0 : index
    %c0_58 = arith.constant 0 : index
    %c0_59 = arith.constant 0 : index
    %113 = vector.load %arg16[%c0_57, %c0_58, %c0_59] : memref<2x8x32xf32, #tpu.memory_space<vmem>>, vector<2x8x32xf32>
    tpu.vector_store %arg16[%c0_57, %c0_58, %c0_59], %112 {strides = array<i32>} : memref<2x8x32xf32, #tpu.memory_space<vmem>>, vector<2x8x32xf32>,
    %c1_i32 = arith.constant 1 : i32
    %114 = arith.cmpi eq, %arg1, %c1_i32 : i32
    %115 = arith.extui %114 : i1 to i32
    %c0_i32_60 = arith.constant 0 : i32
    %116 = arith.cmpi ne, %115, %c0_i32_60 : i32
    scf.if %116 {
      %c0_61 = arith.constant 0 : index
      %c0_62 = arith.constant 0 : index
      %c0_63 = arith.constant 0 : index
      %117 = vector.load %arg16[%c0_61, %c0_62, %c0_63] : memref<2x8x32xf32, #tpu.memory_space<vmem>>, vector<2x8x32xf32>
      %c0_64 = arith.constant 0 : index
      %c0_65 = arith.constant 0 : index
      %c0_66 = arith.constant 0 : index
      %118 = vector.load %arg15[%c0_64, %c0_65, %c0_66] : memref<2x8x32xf32, #tpu.memory_space<vmem>>, vector<2x8x32xf32>
      tpu.vector_store %arg15[%c0_64, %c0_65, %c0_66], %117 {strides = array<i32>} : memref<2x8x32xf32, #tpu.memory_space<vmem>>, vector<2x8x32xf32>,
    } else {
    }
    return
  }
  func.func @transform_0(%arg0: i32, %arg1: i32) -> (i32, i32, i32) {
    %c0_i32 = arith.constant 0 : i32
    %c0_i32_0 = arith.constant 0 : i32
    %c0_i32_1 = arith.constant 0 : i32
    return %arg0, %c0_i32, %c0_i32_0 : i32, i32, i32
  }
  func.func @transform_1(%arg0: i32, %arg1: i32) -> (i32, i32, i32) {
    %c0_i32 = arith.constant 0 : i32
    %c0_i32_0 = arith.constant 0 : i32
    %c0_i32_1 = arith.constant 0 : i32
    return %arg1, %c0_i32, %c0_i32_0 : i32, i32, i32
  }
  func.func @transform_2(%arg0: i32, %arg1: i32) -> (i32, i32, i32) {
    %c0_i32 = arith.constant 0 : i32
    %c0_i32_0 = arith.constant 0 : i32
    %c0_i32_1 = arith.constant 0 : i32
    return %arg1, %c0_i32, %c0_i32_0 : i32, i32, i32
  }
  func.func @transform_3(%arg0: i32, %arg1: i32) -> (i32, i32, i32) {
    %c0_i32 = arith.constant 0 : i32
    %c0_i32_0 = arith.constant 0 : i32
    %c0_i32_1 = arith.constant 0 : i32
    return %arg1, %c0_i32, %c0_i32_0 : i32, i32, i32
  }
  func.func @transform_4(%arg0: i32, %arg1: i32) -> (i32, i32, i32) {
    %c0_i32 = arith.constant 0 : i32
    %c0_i32_0 = arith.constant 0 : i32
    %c0_i32_1 = arith.constant 0 : i32
    return %arg1, %c0_i32, %c0_i32_0 : i32, i32, i32
  }
  func.func @transform_5(%arg0: i32, %arg1: i32) -> (i32, i32, i32) {
    %c0_i32 = arith.constant 0 : i32
    %c0_i32_0 = arith.constant 0 : i32
    %c0_i32_1 = arith.constant 0 : i32
    return %arg1, %c0_i32, %c0_i32_0 : i32, i32, i32
  }
  func.func @transform_6(%arg0: i32, %arg1: i32) -> (i32, i32, i32) {
    %c0_i32 = arith.constant 0 : i32
    %c0_i32_0 = arith.constant 0 : i32
    %c0_i32_1 = arith.constant 0 : i32
    return %arg1, %c0_i32, %c0_i32_0 : i32, i32, i32
  }
  func.func @transform_7(%arg0: i32, %arg1: i32) -> (i32, i32, i32) {
    %c0_i32 = arith.constant 0 : i32
    %c0_i32_0 = arith.constant 0 : i32
    %c0_i32_1 = arith.constant 0 : i32
    return %arg1, %c0_i32, %c0_i32_0 : i32, i32, i32
  }
  func.func @transform_8(%arg0: i32, %arg1: i32) -> (i32, i32, i32) {
    %c0_i32 = arith.constant 0 : i32
    %c0_i32_0 = arith.constant 0 : i32
    %c0_i32_1 = arith.constant 0 : i32
    return %arg1, %c0_i32, %c0_i32_0 : i32, i32, i32
  }
  func.func @transform_9(%arg0: i32, %arg1: i32) -> (i32, i32, i32) {
    %c0_i32 = arith.constant 0 : i32
    %c0_i32_0 = arith.constant 0 : i32
    %c0_i32_1 = arith.constant 0 : i32
    return %arg1, %c0_i32, %c0_i32_0 : i32, i32, i32
  }
  func.func @transform_10(%arg0: i32, %arg1: i32) -> (i32, i32, i32) {
    %c0_i32 = arith.constant 0 : i32
    %c0_i32_0 = arith.constant 0 : i32
    %c0_i32_1 = arith.constant 0 : i32
    return %arg1, %c0_i32, %c0_i32_0 : i32, i32, i32
  }
  func.func @transform_11(%arg0: i32, %arg1: i32) -> (i32, i32, i32) {
    %c0_i32 = arith.constant 0 : i32
    %c0_i32_0 = arith.constant 0 : i32
    %c0_i32_1 = arith.constant 0 : i32
    return %arg1, %c0_i32, %c0_i32_0 : i32, i32, i32
  }
  func.func @transform_12(%arg0: i32, %arg1: i32) -> (i32, i32, i32) {
    %c0_i32 = arith.constant 0 : i32
    %c0_i32_0 = arith.constant 0 : i32
    %c0_i32_1 = arith.constant 0 : i32
    return %arg1, %c0_i32, %c0_i32_0 : i32, i32, i32
  }
  func.func @transform_13(%arg0: i32, %arg1: i32) -> (i32, i32, i32) {
    %c0_i32 = arith.constant 0 : i32
    %c0_i32_0 = arith.constant 0 : i32
    %c0_i32_1 = arith.constant 0 : i32
    return %arg0, %c0_i32, %c0_i32_0 : i32, i32, i32
  }
}

</mosaic_0001>

<bundles_post_ra>
// kernel: tpu_custom_call.1
= control target key start
LH: loop header
LB: loop body
LE: loop exit
PB: predicated region body
PF: predicated region fallthrough
CT: control target
= control target key end

     0   :  { %s2065_s0 = inlined_call_operand.hbm [shape: f32[2,8,32], index: 0, kind: input, shape index: {}]   ;;  %s2066_s1 = inlined_call_operand.vmem [shape: bf16[2,32,96], index: 1, kind: input, shape index: {}]   ;;  %s2067_s2 = inlined_call_operand.vmem [shape: f32[2,1,96], index: 2, kind: input, shape index: {}]   ;;  %s2068_s3 = inlined_call_operand.vmem [shape: bf16[2,32,32], index: 3, kind: input, shape index: {}]   ;;  %s2069_s4 = inlined_call_operand.vmem [shape: f32[2,1,32], index: 4, kind: input, shape index: {}]   ;;  %s2070_s5 = inlined_call_operand.vmem [shape: bf16[2,32,64], index: 5, kind: input, shape index: {}]   ;;  %s2071_s6 = inlined_call_operand.vmem [shape: f32[2,1,64], index: 6, kind: input, shape index: {}]   ;;  %s2072_s7 = inlined_call_operand.vmem [shape: bf16[2,64,32], index: 7, kind: input, shape index: {}]   ;;  %s2073_s8 = inlined_call_operand.vmem [shape: f32[2,1,32], index: 8, kind: input, shape index: {}]   ;;  %s2074_s9 = inlined_call_operand.vmem [shape: f32[2,1,32], index: 9, kind: input, shape index: {}]   ;;  %s2075_s10 = inlined_call_operand.vmem [shape: f32[2,1,32], index: 10, kind: input, shape index: {}]   ;;  %s2076_s11 = inlined_call_operand.vmem [shape: f32[2,1,32], index: 11, kind: input, shape index: {}]   ;;  %s2077_s12 = inlined_call_operand.vmem [shape: f32[2,1,32], index: 12, kind: input, shape index: {}]   ;;  %s2078_s13 = inlined_call_operand.hbm [shape: f32[2,8,32], index: 13, kind: output, shape index: {}]  }
   0x1   :  { %2082 = sst [smem:[#allocation12_spill]] %s2065_s0 }
   0x2   :  { %2083 = sst [smem:[#allocation13_spill]] %s2066_s1 }
   0x3   :  { %2084 = sst [smem:[#allocation14_spill]] %s2068_s3 }
   0x4   :  { %2085 = sst [smem:[#allocation15_spill]] %s2070_s5 }
   0x5   :  { %2086 = sst [smem:[#allocation16_spill]] %s2078_s13 }
   0x6   :  { %18 = vsyncpa [#allocation4], 0 }
   0x7   :  { %19 = vsyncpa [#allocation5], 0  ;;  %s1824_s25 = smov 0   ;;  %s1826_s26 = smov 0  }
   0x8   :  { %s1828_s27 = smov 0  }
   0x9 LB: > { %2087 = sst [smem:[#allocation9_spill]] %s1738_s26  ;;  %s2079_s28 = sadd.s32 4294967295, %s1742_s27   ;;  %s1742_s27 = sphi %s1828_s27, %s25_s27   ;;  %s1738_s26 = sphi %s1826_s26, %s2105_s26   ;;  %s1734_s25 = sphi %s1824_s25, %s2104_s25  }
   0xa   : > { %2088 = sst [smem:[#allocation10_spill]] %s1742_s27  ;;  %s34_s29 = sadd.s32 1, %s1738_s26 }
   0xb   : > { %p35_p0 = scmp.ge.s32.totalorder %s34_s29, 2  ;;  %p1455_p1 = scmp.ge.s32.totalorder %s1742_s27, 1 }
   0xc   : > { %p406_p2 = scmp.lt.s32.totalorder %s1742_s27, 3  ;;  %p1851_p4 = scmp.eq.s32.totalorder %s2079_s28, 0 }
   0xd   : > { %s2107_s29 = smov (%p35_p0, %s34_s29), 0  ;;  %s1744_s15 = smov [#allocation3]  }
   0xe   : > { %2089 = sst [smem:[#allocation11_spill]] %s2107_s29  ;;  %p1845_p3 = pnand %p1455_p1, %p406_p2 }
   0xf   : > { %s421_s16 = sshll.u32 %s1744_s15, 4  ;;  %s422_s16 = int_to_ptr.vmem [resolvable:$true] %s421_s16 }
  0x10   : > { %p1594_p5 = pneg %p1845_p3  ;;  %s1673_s17 = scalar_lea.vmem %s422_s16, 256 }
  0x11   : > { %p1674_p8 = scmp.ne.s32.totalorder %s422_s16, %s1673_s17  ;;  %p1681_p11 = scmp.lt.s32.totalorder %s422_s16, %s422_s16 }
  0x12   : > { %p1595_p6 = pnand %p1851_p4, %p1594_p5  ;;  %p1682_p12 = scmp.lt.s32.totalorder %s1673_s17, %s1673_s17 }
  0x14   : > { %p1664_p7 = pneg %p1595_p6  ;;  %p1683_p13 = por %p1682_p12, %p1681_p11 }
  0x16   : > { %p1676_p9 = pnand %p1674_p8, %p1664_p7 }
  0x18   : > { %p1677_p10 = pneg %p1676_p9 }
  0x1a   : > { %p1684_p0 = pnand %p1683_p13, %p1677_p10 }
  0x1c   : > { %1687 = shalt.err (!%p1684_p0)
}
  0x1d   : > { %s1745_s18 = smov 128   ;;  %s1746_s19 = smov 8  }
  0x1e   : > { %s2092_s0 = sld [smem:[#allocation12_spill]] }
  0x20   : > { %517 = sbr.rel (%p1845_p3) target bundleno = 2346 (0x92a), region = 72 }
  0x24   : > { %1597 = dma.hbm_to_vmem [thread:$0]  (!%p1595_p6), %s2092_s0, 256, %s422_s16, [#allocation4], %s1745_s18, %s1745_s18, %s1746_s19  }
  0x25   : > { %1725 = dma.done.wait (%p1851_p4), [#allocation4], 256  }
  0x26   : > { %1727 = vsyncadd (%p1851_p4), [#allocation4], 4294967040  ;;  %p596_p1 = scmp.lt.s32.totalorder %s1734_s25, 1  ;;  %s2093_s1 = sld [smem:[#allocation13_spill]] }
  0x27   : > { %s2094_s3 = sld [smem:[#allocation14_spill]]  ;;  %p1468_p2 = scmp.ne.s32.totalorder %s1734_s25, 0 }
  0x28   : > { %s1870_s22 = scalar_select %p596_p1, %s1734_s25, 1 }
  0x29   : > { %s2095_s5 = sld [smem:[#allocation15_spill]] }
  0x2a   : > { %s1500_s23 = sshll.u32 %s1870_s22, 4  ;;  %s1503_s15 = sshll.u32 %s1870_s22, 5 }
  0x2b   : > { %s1902_s18 = scalar_lea.vmem %s2072_s7, %s1503_s15  ;;  %s627_s28 = scalar_lea.vmem %s2073_s8, %s1870_s22 }
  0x2c   : > { %s600_s17 = scalar_lea.vmem %s2093_s1, %s1500_s23  ;;  %s630_s26 = scalar_lea.vmem %s2074_s9, %s1870_s22 }
  0x2d   : > { %s1883_s20 = scalar_lea.vmem %s2094_s3, %s1500_s23  ;;  %s636_s14 = scalar_lea.vmem %s2076_s11, %s1870_s22 }
  0x2e   : > { %s639_s15 = scalar_lea.vmem %s2077_s12, %s1870_s22  ;;  %645 = sbr.rel (%p1468_p2) target bundleno = 53 (0x35), region = 80 }
  0x2f   : > { %s1892_s13 = scalar_lea.vmem %s2095_s5, %s1500_s23  ;;  %s633_s5 = scalar_lea.vmem %s2075_s10, %s1870_s22 }
  0x33   : > { %v646_v0 = vld [vmem:[#allocation3] sm:$0xff]  ;;  %vm648_vm0 = vcmask 261120   ;;  %v647_v1 = vld [vmem:[#allocation3 + $0x8] sm:$0xff] }
  0x34   : > { %649 = vst.msk [vmem:[#allocation2] sm:$0xff] %vm648_vm0, %v646_v0  ;;  %650 = vst.msk [vmem:[#allocation2 + $0x8] sm:$0xff] %vm648_vm0, %v647_v1 }
  0x35 PF: > { %v1636_v2 = vld [vmem:[%s600_s17 + $0x8] sm:$0xff]   ;;  %v1747_v3 = vmov 0.0   ;;  %v1637_v4 = vld [vmem:[%s600_s17] sm:$0xff]   ;;  %vm1748_vm1 = vmmov 0   ;;  %vm677_vm2 = vcmask 261120   ;;  %s2096_s27 = scalar_lea.vmem %s2067_s2, %s1870_s22  ;;  %s1749_s17 = smov 96  }
  0x36   : > { %1526 = vmatprep.subr.bf16.mxu0 %v1747_v3  ;;  %1534 = vmatprep.subr.bf16.mxu1 %v1747_v3  ;;  %v1469_v8 = vld [vmem:[%s2096_s27] ss:$0 sm:$0xff]  ;;  %vm822_vm3 = vcmask 64512   ;;  %s1750_s16 = smov 64   ;;  %vm852_vm4 = vcmask 1043456   ;;  %v1638_v53 = vld [vmem:[%s1883_s20 + $0x8] sm:$0xff]  }
  0x37   : > { %1527 = vmatpush3.bf16.msra.mxu0 %v1636_v2  ;;  %1530 = vmatprep.mubr.msk.bf16.mxu0 %vm1748_vm1, %v1747_v3  ;;  %v1639_v54 = vld [vmem:[%s1883_s20] sm:$0xff]   ;;  %s2097_s20 = scalar_lea.vmem %s2069_s4, %s1870_s22  ;;  %vm1169_vm5 = vcmask 523264   ;;  %p1495_p3 = scmp.ne.s32.totalorder %s1734_s25, 1 }
  0x38   : > { %1528 = vmatprep.subr.bf16.mxu0 %v1747_v3  ;;  %1536 = vmatprep.mubr.msk.bf16.mxu1 %vm1748_vm1, %v1747_v3  ;;  %v1477_v0 = vld [vmem:[%s2097_s20] ss:$0 sm:$0xff] }
  0x3b   : > { %v1929_v5 = vld [vmem:[#allocation2] sm:$0xff]  ;;  %v1931_v6 = vld [vmem:[#allocation2 + $0x8] sm:$0xff]  ;;  %1529 = vmatpush3.bf16.msra.mxu0 %v1637_v4 }
  0x3c   : > { %v653_v7 = vpack.c.bf16 %v1931_v6, %v1929_v5  ;;  %1540 = vmatprep.subr.bf16.mxu0 %v1747_v3 }
  0x3e   : > { %1531 = vmatmul.mubr.msk.bf16.vlgmr.msra.gmra.mxu0 %vm677_vm2, %v653_v7 }
  0x3f   : > { %1542 = vmatprep.mubr.msk.bf16.mxu0 %vm1748_vm1, %v1747_v3 }
  0xfe   : > { %v715_v9 = vpop.f32.mrf.mxu0 }
  0xff   : > { %v716_v10 = vadd.f32 %v1469_v8, %v715_v9 }
 0x100   : > { %v1532_v11 = vpop.f32.mrf.mxu0 }
 0x101   : > { %v722_v12 = vpack.c.bf16 %v716_v10, %v716_v10 }
 0x102   : > { %v718_v13 = vpop.f32.mrf.mxu0 }
 0x103   : > { %v719_v14 = vadd.f32 %v1469_v8, %v718_v13  ;;  %725 = vrot.lane.b32.xlu0 %v722_v12, %s1749_s17 }
 0x104   : > { %v1533_v15 = vpop.f32.mrf.mxu0 }
 0x105   : > { %v723_v16 = vpack.c.bf16 %v719_v14, %v719_v14 }
 0x107   : > { %774 = vrot.lane.b32.xlu0 %v723_v16, %s1749_s17 }
 0x175   : > { %v726_v17 = vpop.permute.xlu0 %725 }
 0x176   : > { %v731_v18 = vsel %vm677_vm2, %v726_v17, 0 }
 0x177   : > { %1535 = vmatpush3.bf16.xpose.msra.mxu1 %v731_v18 }
 0x178   : > { %1546 = vmatprep.subr.bf16.mxu1 %v1747_v3 }
 0x179   : > { %v775_v19 = vpop.permute.xlu0 %774 }
 0x17a   : > { %v780_v20 = vsel %vm677_vm2, %v775_v19, 0 }
 0x17b   : > { %1541 = vmatpush3.bf16.xpose.msra.mxu0 %v780_v20 }
 0x17c   : > { %1552 = vmatprep.subr.bf16.mxu0 %v1747_v3 }
 0x17e   : > { %1537 = vmatmul.mubr.msk.bf16.vlgmr.msra.gmra.mxu1 %vm677_vm2, %v722_v12 }
 0x17f   : > { %1548 = vmatprep.mubr.msk.bf16.mxu1 %vm1748_vm1, %v1747_v3 }
 0x182   : > { %1543 = vmatmul.mubr.msk.bf16.vlgmr.msra.gmra.mxu0 %vm677_vm2, %v723_v16 }
 0x183   : > { %1554 = vmatprep.mubr.msk.bf16.mxu0 %vm1748_vm1, %v1747_v3 }
 0x23e   : > { %v767_v21 = vpop.f32.mrf.mxu1 }
 0x23f   : > { %v823_v22 = vsel %vm822_vm3, %v767_v21, -inf }
 0x240   : > { %824 = vmax.xlane.f32.xlu1 %v823_v22  ;;  %v1538_v23 = vpop.f32.mrf.mxu1 }
 0x241   : > { %v1641_v23 = vld [vmem:[%s1892_s13] sm:$0xff]  }
 0x242   : > { %v770_v24 = vpop.f32.mrf.mxu1  ;;  %v816_v25 = vpop.f32.mrf.mxu0 }
 0x243   : > { %v826_v26 = vsel %vm822_vm3, %v816_v25, -inf  ;;  %v1642_v24 = vld [vmem:[%s1902_s18 + $0x18] sm:$0xff]  }
 0x244   : > { %v1539_v27 = vpop.f32.mrf.mxu1  ;;  %827 = vmax.xlane.f32.xlu1 %v826_v26  ;;  %v1544_v28 = vpop.f32.mrf.mxu0 }
 0x246   : > { %v819_v29 = vpop.f32.mrf.mxu0 }
 0x248   : > { %v1545_v30 = vpop.f32.mrf.mxu0 }
 0x255   : > { %847 = vrot.lane.b32.xlu1 %v722_v12, %s1750_s16 }
 0x2c9   : > { %v825_v31 = vpop.xlane.xlu1 %824 }
 0x2ca   : > { %v829_v32 = vsub.f32 %v767_v21, %v825_v31 }
 0x2cc   : > { %v831_v33 = vmul.f32 1.442695, %v829_v32 }
 0x2cd   : > { %v828_v34 = vpop.xlane.xlu1 %827 }
 0x2ce   : > { %1646 = vpow2.f32 %v831_v33  ;;  %v830_v35 = vsub.f32 %v816_v25, %v828_v34  ;;  %v1481_v33 = vld [vmem:[%s630_s26] ss:$0 sm:$0xff] }
 0x2d0   : > { %v833_v36 = vmul.f32 1.442695, %v830_v35 }
 0x2d1   : > { %v848_v37 = vpop.permute.xlu1 %847 }
 0x2d2   : > { %1648 = vpow2.f32 %v833_v36  ;;  %v854_v38 = vsel %vm852_vm4, %v848_v37, 0  ;;  %v1482_v37 = vld [vmem:[%s633_s5] ss:$0 sm:$0xff]  ;;  %s2098_s5 = scalar_lea.vmem %s2071_s6, %s1870_s22 }
 0x2d3   : > { %1547 = vmatpush3.bf16.msra.mxu1 %v854_v38 }
 0x2d4   : > { %1558 = vmatprep.subr.bf16.mxu1 %v1747_v3 }
 0x2db   : > { %v1647_v39 = vpop.eup %1646 }
 0x2dc   : > { %v835_v40 = vsel %vm822_vm3, %v1647_v39, 0.0 }
 0x2dd   : > { %836 = vadd.xlane.f32.xlu0 %v835_v40 }
 0x2df   : > { %v1649_v41 = vpop.eup %1648 }
 0x2e0   : > { %v838_v42 = vsel %vm822_vm3, %v1649_v41, 0.0 }
 0x2e1   : > { %839 = vadd.xlane.f32.xlu1 %v838_v42  ;;  %v1643_v42 = vld [vmem:[%s1902_s18 + $0x10] sm:$0xff]  }
 0x2f2   : > { %896 = vrot.lane.b32.xlu1 %v723_v16, %s1750_s16 }
 0x366   : > { %v837_v43 = vpop.xlane.xlu0 %836 }
 0x367   : > { %1650 = vrcp.f32 %v837_v43  ;;  %v1644_v43 = vld [vmem:[%s1902_s18 + $0x8] sm:$0xff]  }
 0x36a   : > { %v840_v44 = vpop.xlane.xlu1 %839 }
 0x36b   : > { %1652 = vrcp.f32 %v840_v44  ;;  %v1645_v44 = vld [vmem:[%s1902_s18] sm:$0xff]  }
 0x36e   : > { %v897_v45 = vpop.permute.xlu1 %896 }
 0x36f   : > { %v902_v46 = vsel %vm852_vm4, %v897_v45, 0  ;;  %v1483_v45 = vld [vmem:[%s2098_s5] ss:$0 sm:$0xff] }
 0x370   : > { %1553 = vmatpush3.bf16.msra.mxu0 %v902_v46 }
 0x371   : > { %1566 = vmatprep.subr.bf16.mxu0 %v1747_v3 }
 0x374   : > { %v1651_v47 = vpop.eup %1650 }
 0x375   : > { %v843_v48 = vmul.f32 %v1651_v47, %v1647_v39 }
 0x377   : > { %v845_v49 = vpack.c.bf16 %v843_v48, %v843_v48 }
 0x378   : > { %v1653_v50 = vpop.eup %1652 }
 0x379   : > { %1549 = vmatmul.mubr.msk.bf16.vlgmr.msra.gmra.mxu1 %vm822_vm3, %v845_v49  ;;  %v844_v51 = vmul.f32 %v1653_v50, %v1649_v41 }
 0x37a   : > { %1562 = vmatprep.mubr.msk.bf16.mxu1 %vm1748_vm1, %v1747_v3  ;;  %1559 = vmatpush3.bf16.msra.mxu1 %v1638_v53 }
 0x37b   : > { %v846_v52 = vpack.c.bf16 %v844_v51, %v844_v51  ;;  %1560 = vmatprep.subr.bf16.mxu1 %v1747_v3 }
 0x37d   : > { %1555 = vmatmul.mubr.msk.bf16.vlgmr.msra.gmra.mxu0 %vm822_vm3, %v846_v52 }
 0x37e   : > { %1570 = vmatprep.mubr.msk.bf16.mxu0 %vm1748_vm1, %v1747_v3  ;;  %1561 = vmatpush3.bf16.msra.mxu1 %v1639_v54 }
 0x37f   : > { %1574 = vmatprep.subr.bf16.mxu1 %v1747_v3 }
 0x439   : > { %v890_v55 = vpop.f32.mrf.mxu1 }
 0x43b   : > { %v1550_v56 = vpop.f32.mrf.mxu1 }
 0x43d   : > { %v893_v57 = vpop.f32.mrf.mxu1  ;;  %v938_v58 = vpop.f32.mrf.mxu0 }
 0x43e   : > { %v944_v59 = vpack.c.bf16 %v938_v58, %v890_v55 }
 0x43f   : > { %v1551_v60 = vpop.f32.mrf.mxu1  ;;  %v1556_v61 = vpop.f32.mrf.mxu0 }
 0x440   : > { %1563 = vmatmul.mubr.msk.bf16.vlgmr.msra.gmra.mxu1 %vm677_vm2, %v944_v59 }
 0x441   : > { %v941_v62 = vpop.f32.mrf.mxu0  ;;  %1582 = vmatprep.mubr.msk.bf16.mxu1 %vm1748_vm1, %v1747_v3  ;;  %1575 = vmatpush3.bf16.msra.mxu1 %v1642_v24 }
 0x442   : > { %1576 = vmatprep.subr.bf16.mxu1 %v1747_v3 }
 0x443   : > { %v1557_v63 = vpop.f32.mrf.mxu0 }
 0x445   : > { %1577 = vmatpush3.bf16.msra.mxu1 %v1643_v42 }
 0x446   : > { %1578 = vmatprep.subr.bf16.mxu1 %v1747_v3 }
 0x449   : > { %1579 = vmatpush3.bf16.msra.mxu1 %v1644_v43 }
 0x44a   : > { %1580 = vmatprep.subr.bf16.mxu1 %v1747_v3 }
 0x44d   : > { %1581 = vmatpush3.bf16.msra.mxu1 %v1645_v44 }
 0x500   : > { %v1005_v1 = vpop.f32.mrf.mxu1 }
 0x501   : > { %v1006_v2 = vadd.f32 %v1477_v0, %v1005_v1 }
 0x502   : > { %v1564_v4 = vpop.f32.mrf.mxu1 }
 0x503   : > { %v1012_v7 = vadd.f32 %v1006_v2, %v1929_v5 }
 0x504   : > { %v1008_v8 = vpop.f32.mrf.mxu1 }
 0x505   : > { %v1009_v9 = vadd.f32 %v1477_v0, %v1008_v8  ;;  %v1016_v10 = vsel %vm677_vm2, %v1012_v7, 0.0 }
 0x506   : > { %1017 = vadd.xlane.f32.xlu1 %v1016_v10  ;;  %v1565_v11 = vpop.f32.mrf.mxu1 }
 0x507   : > { %v1013_v12 = vadd.f32 %v1009_v9, %v1931_v6  ;;  %v1640_v6 = vld [vmem:[%s1892_s13 + $0x8] sm:$0xff]  }
 0x508   : > { %1567 = vmatpush3.bf16.msra.mxu0 %v1640_v6 }
 0x509   : > { %v1019_v13 = vsel %vm677_vm2, %v1013_v12, 0.0  ;;  %1568 = vmatprep.subr.bf16.mxu0 %v1747_v3  ;;  %v1487_v3 = vld [vmem:[%s627_s28] ss:$0 sm:$0xff] }
 0x50a   : > { %1020 = vadd.xlane.f32.xlu0 %v1019_v13 }
 0x50c   : > { %1569 = vmatpush3.bf16.msra.mxu0 %v1641_v23 }
 0x58f   : > { %v1018_v14 = vpop.xlane.xlu1 %1017 }
 0x590   : > { %v1023_v15 = vmul.f32 0.03125, %v1018_v14 }
 0x592   : > { %v1025_v16 = vsub.f32 %v1012_v7, %v1023_v15 }
 0x593   : > { %v1021_v17 = vpop.xlane.xlu0 %1020 }
 0x594   : > { %v1024_v18 = vmul.f32 0.03125, %v1021_v17  ;;  %v1027_v5 = vmul.f32 %v1025_v16, %v1025_v16 }
 0x596   : > { %v1026_v19 = vsub.f32 %v1013_v12, %v1024_v18  ;;  %v1029_v20 = vsel %vm677_vm2, %v1027_v5, 0.0 }
 0x597   : > { %1030 = vadd.xlane.f32.xlu0 %v1029_v20  ;;  %v1493_v20 = vld [vmem:[%s636_s14] ss:$0 sm:$0xff] }
 0x598   : > { %v1028_v21 = vmul.f32 %v1026_v19, %v1026_v19 }
 0x59a   : > { %v1032_v22 = vsel %vm677_vm2, %v1028_v21, 0.0 }
 0x59b   : > { %1033 = vadd.xlane.f32.xlu0 %v1032_v22  ;;  %v1494_v22 = vld [vmem:[%s639_s15] ss:$0 sm:$0xff] }
 0x620   : > { %v1031_v25 = vpop.xlane.xlu0 %1030 }
 0x621   : > { %v1035_v26 = vmul.f32 0.03125, %v1031_v25 }
 0x623   : > { %v1037_v27 = vadd.f32 1e-05, %v1035_v26 }
 0x624   : > { %v1034_v28 = vpop.xlane.xlu0 %1033 }
 0x625   : > { %1654 = vrsqrt.f32 %v1037_v27  ;;  %v1036_v29 = vmul.f32 0.03125, %v1034_v28 }
 0x627   : > { %v1038_v30 = vadd.f32 1e-05, %v1036_v29 }
 0x629   : > { %1656 = vrsqrt.f32 %v1038_v30 }
 0x632   : > { %v1655_v31 = vpop.eup %1654 }
 0x633   : > { %v1041_v32 = vmul.f32 %v1655_v31, %v1025_v16 }
 0x635   : > { %v1049_v36 = vmul.f32 %v1481_v33, %v1041_v32 }
 0x636   : > { %v1657_v34 = vpop.eup %1656 }
 0x637   : > { %v1042_v35 = vmul.f32 %v1657_v34, %v1026_v19  ;;  %v1057_v39 = vadd.f32 %v1482_v37, %v1049_v36 }
 0x639   : > { %v1050_v38 = vmul.f32 %v1481_v33, %v1042_v35 }
 0x63b   : > { %v1058_v40 = vadd.f32 %v1482_v37, %v1050_v38 }
 0x63d   : > { %v1059_v41 = vpack.c.bf16 %v1058_v40, %v1057_v39 }
 0x63f   : > { %1571 = vmatmul.mubr.msk.bf16.vlgmr.msra.gmra.mxu0 %vm677_vm2, %v1059_v41 }
 0x6ff   : > { %v1120_v46 = vpop.f32.mrf.mxu0 }
 0x700   : > { %v1121_v48 = vadd.f32 %v1483_v45, %v1120_v46 }
 0x701   : > { %v1572_v47 = vpop.f32.mrf.mxu0 }
 0x702   : > { %v1127_v52 = vmax.f32 %v1121_v48, 0.0 }
 0x703   : > { %v1123_v49 = vpop.f32.mrf.mxu0 }
 0x704   : > { %v1124_v50 = vadd.f32 %v1483_v45, %v1123_v49 }
 0x705   : > { %v1573_v51 = vpop.f32.mrf.mxu0 }
 0x706   : > { %v1128_v53 = vmax.f32 %v1124_v50, 0.0 }
 0x708   : > { %v1129_v54 = vpack.c.bf16 %v1128_v53, %v1127_v52 }
 0x70a   : > { %1583 = vmatmul.mubr.msk.bf16.vlgmr.msra.gmra.mxu1 %vm1169_vm5, %v1129_v54 }
 0x7ca   : > { %v1207_v55 = vpop.f32.mrf.mxu1 }
 0x7cb   : > { %v1208_v56 = vadd.f32 %v1487_v3, %v1207_v55 }
 0x7cc   : > { %v1584_v57 = vpop.f32.mrf.mxu1 }
 0x7cd   : > { %v1214_v58 = vadd.f32 %v1208_v56, %v1057_v39 }
 0x7ce   : > { %v1210_v59 = vpop.f32.mrf.mxu1 }
 0x7cf   : > { %v1211_v60 = vadd.f32 %v1487_v3, %v1210_v59  ;;  %v1218_v61 = vsel %vm677_vm2, %v1214_v58, 0.0 }
 0x7d0   : > { %1219 = vadd.xlane.f32.xlu0 %v1218_v61  ;;  %v1585_v62 = vpop.f32.mrf.mxu1 }
 0x7d1   : > { %v1215_v63 = vadd.f32 %v1211_v60, %v1058_v40 }
 0x7d3   : > { %v1221_v0 = vsel %vm677_vm2, %v1215_v63, 0.0 }
 0x7d4   : > { %1222 = vadd.xlane.f32.xlu0 %v1221_v0 }
 0x859   : > { %v1220_v1 = vpop.xlane.xlu0 %1219 }
 0x85a   : > { %v1224_v2 = vmul.f32 0.03125, %v1220_v1 }
 0x85c   : > { %v1226_v4 = vsub.f32 %v1214_v58, %v1224_v2 }
 0x85d   : > { %v1223_v7 = vpop.xlane.xlu0 %1222 }
 0x85e   : > { %v1225_v8 = vmul.f32 0.03125, %v1223_v7  ;;  %v1228_v9 = vmul.f32 %v1226_v4, %v1226_v4 }
 0x860   : > { %v1227_v10 = vsub.f32 %v1215_v63, %v1225_v8  ;;  %v1230_v11 = vsel %vm677_vm2, %v1228_v9, 0.0 }
 0x861   : > { %1231 = vadd.xlane.f32.xlu0 %v1230_v11 }
 0x862   : > { %v1229_v12 = vmul.f32 %v1227_v10, %v1227_v10 }
 0x864   : > { %v1233_v13 = vsel %vm677_vm2, %v1229_v12, 0.0 }
 0x865   : > { %1234 = vadd.xlane.f32.xlu0 %v1233_v13 }
 0x8ea   : > { %v1232_v14 = vpop.xlane.xlu0 %1231 }
 0x8eb   : > { %v1236_v15 = vmul.f32 0.03125, %v1232_v14 }
 0x8ed   : > { %v1238_v16 = vadd.f32 1e-05, %v1236_v15 }
 0x8ee   : > { %v1235_v17 = vpop.xlane.xlu0 %1234 }
 0x8ef   : > { %1658 = vrsqrt.f32 %v1238_v16  ;;  %v1237_v18 = vmul.f32 0.03125, %v1235_v17 }
 0x8f1   : > { %v1239_v5 = vadd.f32 1e-05, %v1237_v18 }
 0x8f3   : > { %1660 = vrsqrt.f32 %v1239_v5 }
 0x8fc   : > { %v1659_v19 = vpop.eup %1658 }
 0x8fd   : > { %v1242_v21 = vmul.f32 %v1659_v19, %v1226_v4 }
 0x8ff   : > { %v1250_v6 = vmul.f32 %v1493_v20, %v1242_v21 }
 0x900   : > { %v1661_v23 = vpop.eup %1660 }
 0x901   : > { %v1258_v24 = vadd.f32 %v1494_v22, %v1250_v6  ;;  %v1243_v25 = vmul.f32 %v1661_v23, %v1227_v10 }
 0x903   : > { %1260 = vst.msk [vmem:[#allocation2] sm:$0xff] %vm677_vm2, %v1258_v24  ;;  %v1251_v26 = vmul.f32 %v1493_v20, %v1243_v25  ;;  %1265 = sbr.rel (%p1495_p3) target bundleno = 2320 (0x910), region = 84 }
 0x905   : > { %v1259_v27 = vadd.f32 %v1494_v22, %v1251_v26 }
 0x907   : > { %1261 = vst.msk [vmem:[#allocation2 + $0x8] sm:$0xff] %vm677_vm2, %v1259_v27 }
 0x90a   : > { %v1266_v28 = vld [vmem:[#allocation2] sm:$0xff] }
 0x90b   : > { %1268 = vst.msk [vmem:[#allocation6] sm:$0xff] %vm677_vm2, %v1266_v28 }
 0x90e   : > { %v1267_v29 = vld [vmem:[#allocation2 + $0x8] sm:$0xff] }
 0x90f   : > { %1269 = vst.msk [vmem:[#allocation6 + $0x8] sm:$0xff] %vm677_vm2, %v1267_v29 }
 0x910 PF: > { %s2099_s22 = sld [smem:[#allocation10_spill]]  ;;  %s1751_s17 = smov [#allocation6]  }
 0x911   : > { %s1279_s16 = sshll.u32 %s1751_s17, 4  ;;  %s1280_s16 = int_to_ptr.vmem [resolvable:$true] %s1279_s16 }
 0x912   : > { %s1688_s19 = scalar_lea.vmem %s1280_s16, 256  ;;  %p1695_p8 = scmp.lt.s32.totalorder %s1280_s16, %s1280_s16 }
 0x913   : > { %p1689_p5 = scmp.ne.s32.totalorder %s1280_s16, %s1688_s19  ;;  %p1696_p9 = scmp.lt.s32.totalorder %s1688_s19, %s1688_s19 }
 0x915   : > { %p1697_p10 = por %p1696_p9, %p1695_p8 }
 0x916   : > { %s2100_s14 = sadd.s32 4294967295, %s2099_s22  }
 0x917   : > { %p2041_p4 = scmp.eq.s32.totalorder %s2100_s14, 1 }
 0x919   : > { %p1690_p6 = pnand %p1689_p5, %p2041_p4 }
 0x91b   : > { %p1691_p7 = pneg %p1690_p6 }
 0x91d   : > { %p1698_p11 = pnand %p1697_p10, %p1691_p7 }
 0x91f   : > { %1701 = shalt.err (!%p1698_p11)
}
 0x920   : > { %s1752_s25 = smov 128   ;;  %s1753_s21 = smov 8  }
 0x921   : > { %s2102_s29 = sld [smem:[#allocation16_spill]] }
 0x927   : > { %1591 = dma.vmem_to_hbm [thread:$0]  (%p2041_p4), %s1280_s16, 256, %s2102_s29, [#allocation5], %s1752_s25, %s1752_s25, %s1753_s21  }
 0x928   : > { %1729 = dma.done.wait (%p2041_p4), [#allocation5], 256  }
 0x929   : > { %1731 = vsyncadd (%p2041_p4), [#allocation5], 4294967040 }
 0x92a PF: > { %s2103_s23 = sld [smem:[#allocation10_spill]] }
 0x92b   : > { %s2104_s25 = sld [smem:[#allocation9_spill]] }
 0x92c   : > { %s2105_s26 = sld [smem:[#allocation11_spill]] }
 0x930   : > { %s25_s27 = sadd.s32 1, %s2103_s23  }
 0x931   : > { %p22_p12 = scmp.ge.s32.totalorder %s25_s27, 4  }
 0x933   :  { %24 = sbr.rel (!%p22_p12) target bundleno = 9 (0x9), region = 147 }
 0x938   :  { %1295 = vsyncpa [#allocation4], 1 }
 0x939   :  { %1297 = vsyncpa [#allocation4 + $0x1], 1 }
 0x93a   :  { %1298 = vsyncpa [#allocation5], 1 }
 0x93b   :  { %1300 = vsyncpa [#allocation5 + $0x1], 1 }

</bundles_post_ra>
